<compile_context>
chip_gen: v5e
topology: v5e:2x2
jax: 0.10.0
libtpu: 0.0.40
codegen_flags: <defaults>
</compile_context>

<pallas_src>
import jax
import jax.numpy as jnp
from jax.experimental import pallas as pl
from jax.experimental.pallas import tpu as pltpu  # noqa: F401  (TPU backend)

EPSILON = 1e-06   # matches the module: nn.BatchNorm1d(cout, eps=EPSILON)
LANES = 128


def _network_kernel(x_ref, p_ref, o_ref):
    cin = x_ref.shape[1]

    # Parameter slab rows: [0:cin] = W^T (cin, C_pad), [cin] = gamma, [cin+1] = beta.
    wt = p_ref[0:cin, :]                                          # (cin, C_pad)
    gamma = p_ref[cin:cin + 1, :]                                 # (1, C_pad)
    beta = p_ref[cin + 1:cin + 2, :]                              # (1, C_pad)

    # Linear (bias omitted -- it cancels under training-mode BatchNorm):
    # y = x @ W^T with a lane-dense RHS, standard (1,0) contraction.
    y = jax.lax.dot_general(
        x_ref[...], wt,
        dimension_numbers=(((1,), (0,)), ((), ())),
        preferred_element_type=jnp.float32,
    )                                                             # (B, C_pad) f32

    n = y.shape[0]
    inv_n = 1.0 / n
    mean = jnp.sum(y, axis=0, keepdims=True) * inv_n              # (1, C_pad)
    mean_sq = jnp.sum(y * y, axis=0, keepdims=True) * inv_n       # (1, C_pad)
    # Biased batch variance, single pass; clamp at 0 so f32 cancellation in
    # E[y^2]-mean^2 can never push rsqrt(var+eps) into NaN territory.
    var = jnp.maximum(mean_sq - mean * mean, 0.0)
    inv_std = jax.lax.rsqrt(var + EPSILON)                        # (1, C_pad)

    scale = gamma * inv_std                                       # (1, C_pad)
    shift = beta - scale * mean                                   # (1, C_pad)

    # Single (B, C_pad)-wide FMA + tanh, lane-dense unmasked store.
    o_ref[...] = jnp.tanh(y * scale + shift).astype(o_ref.dtype)


def prepare_params(w, gamma, beta, cout_pad=LANES):
    """One-time (outside the hot path) transpose/pad/pack of the parameters.

    w:     (cout, cin)  -> transposed + zero-padded to (cin, cout_pad)
    gamma: (cout,)      -> padded with 1.0
    beta:  (cout,)      -> padded with 0.0
    Returns a single (cin + 2, cout_pad) f32 slab:
      rows 0..cin-1 = W^T, row cin = gamma, row cin+1 = beta.
    Padded columns produce y=0, var=0 -> rsqrt(eps) (finite), output tanh(0)=0.
    """
    cout, cin = w.shape
    pad = cout_pad - cout
    wt_pad = jnp.pad(w.T, ((0, 0), (0, pad)))                     # (cin, cout_pad)
    gamma_pad = jnp.pad(gamma, (0, pad), constant_values=1.0)
    beta_pad = jnp.pad(beta, (0, pad))
    packed = jnp.concatenate(
        [wt_pad, gamma_pad[None, :], beta_pad[None, :]], axis=0)  # (cin+2, cout_pad)
    return packed.astype(jnp.float32)


def network_model_forward(x, packed):
    """x: (B, cin) f32, packed: (cin+2, C_pad) f32.

    Returns the padded (B, C_pad) output; the caller slices [:, :cout] (or,
    better, consumes the padded block directly / fuses the slice downstream).
    """
    B, cin = x.shape
    c_pad = packed.shape[1]

    full = lambda shape: pl.BlockSpec(shape, lambda: (0,) * len(shape))
    out = pl.pallas_call(
        _network_kernel,
        out_shape=jax.ShapeDtypeStruct((B, c_pad), jnp.float32),
        grid=(),
        in_specs=[
            full((B, cin)),          # activations
            full((cin + 2, c_pad)),  # packed [W^T; gamma; beta]
        ],
        out_specs=full((B, c_pad)),
    )(x, packed)
    return out


if __name__ == "__main__":
    # Small shapes consistent with the module: batch=8, cin=32, cout=32
    B, CIN, COUT = 8, 32, 32
    key = jax.random.PRNGKey(0)
    kx, kw, kb = jax.random.split(key, 3)

    x = jax.random.normal(kx, (B, CIN), dtype=jnp.float32)

    # Parameter init mirroring the module's __init__:
    #   linear.weight ~ Normal(0, 5/sqrt(cin+cout))
    #   linear.bias   ~ Uniform(-1/sqrt(cin), 1/sqrt(cin))  (PyTorch default;
    #   it cancels under training-mode BN so the kernel never sees it)
    #   bn.weight = 1, bn.bias = 0
    std = 5.0 / jnp.sqrt(jnp.float32(CIN + COUT))
    w = std * jax.random.normal(kw, (COUT, CIN), dtype=jnp.float32)
    bound = 1.0 / jnp.sqrt(jnp.float32(CIN))
    b = jax.random.uniform(kb, (COUT,), minval=-bound, maxval=bound,
                           dtype=jnp.float32)
    gamma = jnp.ones((COUT,), dtype=jnp.float32)
    beta = jnp.zeros((COUT,), dtype=jnp.float32)

    packed = prepare_params(w, gamma, beta)
    out_padded = network_model_forward(x, packed)                 # (B, 128)
    jax.block_until_ready(out_padded)
    # Consumers can take the padded block directly; slice only where the exact
    # module shape is required (here: the correctness check).
    out = out_padded[:, :COUT]

    # Reference: the exact module math (bias included) in pure JAX.
    y_ref = x @ w.T + b
    m = y_ref.mean(axis=0, keepdims=True)
    v = ((y_ref - m) ** 2).mean(axis=0, keepdims=True)
    ref = jnp.tanh(gamma * (y_ref - m) / jnp.sqrt(v + EPSILON) + beta)
    assert out.shape == (B, COUT)
    assert jnp.allclose(out, ref, atol=1e-5, rtol=1e-5)

    print("KERNEL_OK")
</pallas_src>

<mosaic_0001>
module attributes {stable_mosaic.version = 11 : i64} {
  func.func @_network_kernel(%arg0: memref<8x32xf32, #tpu.memory_space<vmem>>, %arg1: memref<34x128xf32, #tpu.memory_space<vmem>>, %arg2: memref<8x128xf32, #tpu.memory_space<vmem>>) attributes {dimension_semantics = [], scalar_prefetch = 0 : i64, scratch_operands = 0 : i64, tpu.core_type = #tpu.core_type<tc>} {
    %c0 = arith.constant 0 : index
    %c0_0 = arith.constant 0 : index
    %0 = vector.load %arg1[%c0, %c0_0] : memref<34x128xf32, #tpu.memory_space<vmem>>, vector<32x128xf32>
    %c32 = arith.constant 32 : index
    %c0_1 = arith.constant 0 : index
    %1 = vector.load %arg1[%c32, %c0_1] : memref<34x128xf32, #tpu.memory_space<vmem>>, vector<1x128xf32>
    %c33 = arith.constant 33 : index
    %c0_2 = arith.constant 0 : index
    %2 = vector.load %arg1[%c33, %c0_2] : memref<34x128xf32, #tpu.memory_space<vmem>>, vector<1x128xf32>
    %c0_3 = arith.constant 0 : index
    %c0_4 = arith.constant 0 : index
    %3 = vector.load %arg0[%c0_3, %c0_4] : memref<8x32xf32, #tpu.memory_space<vmem>>, vector<8x32xf32>
    %cst = arith.constant dense<0.000000e+00> : vector<8x128xf32>
    %4 = tpu.matmul %3, %0, %cst {dimension_numbers = #tpu.dot_dimension_numbers<[1], [0], [0], [1], [0, 0, 1, 1], [], []>} : vector<8x32xf32>, vector<32x128xf32>, vector<8x128xf32> -> vector<8x128xf32>
    %cst_5 = arith.constant dense<0.000000e+00> : vector<128xf32>
    %5 = vector.multi_reduction <add>, %4, %cst_5 [0] : vector<8x128xf32> to vector<128xf32>
    %6 = vector.shape_cast %5 : vector<128xf32> to vector<1x128xf32>
    %cst_6 = arith.constant 1.250000e-01 : f32
    %7 = vector.broadcast %cst_6 : f32 to vector<1x128xf32>
    %8 = arith.mulf %6, %7 : vector<1x128xf32>
    %9 = arith.mulf %4, %4 : vector<8x128xf32>
    %cst_7 = arith.constant dense<0.000000e+00> : vector<128xf32>
    %10 = vector.multi_reduction <add>, %9, %cst_7 [0] : vector<8x128xf32> to vector<128xf32>
    %11 = vector.shape_cast %10 : vector<128xf32> to vector<1x128xf32>
    %cst_8 = arith.constant 1.250000e-01 : f32
    %12 = vector.broadcast %cst_8 : f32 to vector<1x128xf32>
    %13 = arith.mulf %11, %12 : vector<1x128xf32>
    %14 = arith.mulf %8, %8 : vector<1x128xf32>
    %15 = arith.subf %13, %14 : vector<1x128xf32>
    %cst_9 = arith.constant 0.000000e+00 : f32
    %16 = vector.broadcast %cst_9 : f32 to vector<1x128xf32>
    %17 = arith.maximumf %15, %16 : vector<1x128xf32>
    %cst_10 = arith.constant 9.99999997E-7 : f32
    %18 = vector.broadcast %cst_10 : f32 to vector<1x128xf32>
    %19 = arith.addf %17, %18 : vector<1x128xf32>
    %20 = math.rsqrt %19 : vector<1x128xf32>
    %21 = arith.mulf %1, %20 : vector<1x128xf32>
    %22 = arith.mulf %21, %8 : vector<1x128xf32>
    %23 = arith.subf %2, %22 : vector<1x128xf32>
    %24 = vector.broadcast %21 : vector<1x128xf32> to vector<8x128xf32>
    %25 = arith.mulf %4, %24 : vector<8x128xf32>
    %26 = vector.broadcast %23 : vector<1x128xf32> to vector<8x128xf32>
    %27 = arith.addf %25, %26 : vector<8x128xf32>
    %28 = math.tanh %27 : vector<8x128xf32>
    %c0_11 = arith.constant 0 : index
    %c0_12 = arith.constant 0 : index
    %29 = vector.load %arg2[%c0_11, %c0_12] : memref<8x128xf32, #tpu.memory_space<vmem>>, vector<8x128xf32>
    tpu.vector_store %arg2[%c0_11, %c0_12], %28 {strides = array<i32>} : memref<8x128xf32, #tpu.memory_space<vmem>>, vector<8x128xf32>,
    return
  }
}

</mosaic_0001>

<bundles_post_ra>
// kernel: tpu_custom_call.1
= control target key start
LH: loop header
LB: loop body
LE: loop exit
PB: predicated region body
PF: predicated region fallthrough
CT: control target
= control target key end

     0   :  { %7 = vsyncpa [#allocation3], 0  ;;  %s246_s0 = inlined_call_operand.hbm [shape: f32[8,32], index: 0, kind: input, shape index: {}]   ;;  %s247_s1 = inlined_call_operand.hbm [shape: f32[34,128], index: 1, kind: input, shape index: {}]   ;;  %s248_s2 = inlined_call_operand.hbm [shape: f32[8,128], index: 2, kind: output, shape index: {}]  }
   0x1   :  { %8 = vsyncpa [#allocation6], 0 }
   0x2   :  { %9 = vsyncpa [#allocation4], 0  ;;  %s15_s11 = sshll.u32 %s246_s0, 4  ;;  %s217_s12 = smov [#allocation2]   ;;  %s16_s11 = int_to_ptr.hbm [resolvable:$true] %s15_s11 }
   0x3   :  { %s17_s13 = sshll.u32 %s217_s12, 4  ;;  %s25_s16 = sshll.u32 %s247_s1, 4  ;;  %s18_s13 = int_to_ptr.vmem [resolvable:$true] %s17_s13  ;;  %s26_s16 = int_to_ptr.hbm [resolvable:$true] %s25_s16 }
   0x4   :  { %20 = dma.hbm_to_vmem [thread:$0]  %s16_s11, 128, %s18_s13, [#allocation3]  }
   0x5   :  { %s218_s17 = smov [#allocation5]   ;;  %s219_s19 = smov 128  }
   0x6   :  { %s27_s18 = sshll.u32 %s218_s17, 4  ;;  %s220_s20 = smov 8   ;;  %s28_s18 = int_to_ptr.vmem [resolvable:$true] %s27_s18 }
   0x7   :  { %33 = dma.hbm_to_vmem [thread:$0]  %s26_s16, 640, %s28_s18, [#allocation6], %s219_s19, %s219_s19, %s220_s20  }
   0x8   :  { %211 = dma.done.wait [#allocation3], 128  }
   0x9   :  { %212 = vsyncadd [#allocation3], 4294967168 }
   0xa   :  { %213 = dma.done.wait [#allocation6], 640  }
   0xb   :  { %214 = vsyncadd [#allocation6], 4294966656  ;;  %v45_v0 = vld [vmem:[#allocation5 + $0x18] sm:$0xff]  ;;  %v44_v1 = vld [vmem:[#allocation5 + $0x10] sm:$0xff]  ;;  %vm49_vm0 = vcmask 261120   ;;  %s221_s0 = smov [#allocation7]  }
   0xc   :  { %65 = vmatpush.msra.mxu0 %v45_v0  ;;  %v43_v2 = vld [vmem:[#allocation5 + $0x8] sm:$0xff]  ;;  %v42_v3 = vld [vmem:[#allocation5] sm:$0xff]  ;;  %v48_v4 = vld [vmem:[#allocation2] sm:$0xff]  ;;  %s116_s1 = sshll.u32 %s221_s0, 4  ;;  %s118_s23 = sshll.u32 %s248_s2, 4  ;;  %s117_s1 = int_to_ptr.vmem [resolvable:$true] %s116_s1  ;;  %s119_s23 = int_to_ptr.hbm [resolvable:$true] %s118_s23 }
   0xd   :  { %v46_v30 = vld [vmem:[#allocation5 + $0x20] sm:$0x1]  ;;  %v47_v34 = vld [vmem:[#allocation5 + $0x21] sm:$0x1] }
   0xe   :  { %66 = vmatpush.msra.mxu0 %v44_v1 }
  0x10   :  { %67 = vmatpush.msra.mxu0 %v43_v2 }
  0x12   :  { %68 = vmatpush.msra.mxu0 %v42_v3 }
  0x13   :  { %129 = vmatmul.msk.f32.vlgmr.msra.gmra.mxu0 %vm49_vm0, %v48_v4 }
  0x90   :  { %v70_v5 = vpop.f32.mrf.mxu0 }
  0x91   :  { %v73_v6 = vrot.slane %v70_v5, 4  ;;  %v80_v7 = vmul.f32 %v70_v5, %v70_v5 }
  0x93   :  { %v74_v8 = vadd.f32 %v73_v6, %v70_v5  ;;  %v81_v9 = vrot.slane %v80_v7, 4 }
  0x95   :  { %v75_v10 = vrot.slane %v74_v8, 2  ;;  %v82_v11 = vadd.f32 %v81_v9, %v80_v7 }
  0x97   :  { %v76_v12 = vadd.f32 %v75_v10, %v74_v8  ;;  %v83_v13 = vrot.slane %v82_v11, 2 }
  0x99   :  { %v77_v14 = vrot.slane %v76_v12, 1  ;;  %v84_v15 = vadd.f32 %v83_v13, %v82_v11 }
  0x9b   :  { %v78_v16 = vadd.f32 %v77_v14, %v76_v12  ;;  %v85_v17 = vrot.slane %v84_v15, 1 }
  0x9d   :  { %v79_v18 = vmul.f32 0.125, %v78_v16  ;;  %v86_v19 = vadd.f32 %v85_v17, %v84_v15 }
  0x9f   :  { %v87_v20 = vmul.f32 0.125, %v86_v19  ;;  %v88_v21 = vmul.f32 %v79_v18, %v79_v18 }
  0xa1   :  { %v89_v22 = vsub.f32 %v87_v20, %v88_v21 }
  0xa3   :  { %v90_v23 = vmax.f32 %v89_v22, 0.0 }
  0xa5   :  { %v91_v24 = vadd.f32 1e-06, %v90_v23 }
  0xa7   :  { %135 = vrsqrt.f32 %v91_v24  ;;  %vm98_vm2 = vweird.f32 %v91_v24 }
  0xad   :  { %v136_v25 = vpop.eup %135 }
  0xae   :  { %v93_v26 = vmul.f32 %v136_v25, %v91_v24  ;;  %vm99_vm1 = vweird.f32 %v136_v25 }
  0xaf   :  { %vm100_vm3 = vmor %vm98_vm2, %vm99_vm1 }
  0xb0   :  { %v94_v27 = vmul.f32 %v136_v25, %v93_v26 }
  0xb2   :  { %v95_v28 = vmul.f32 0.5, %v94_v27 }
  0xb4   :  { %v96_v29 = vsub.f32 1.5, %v95_v28 }
  0xb6   :  { %v97_v31 = vmul.f32 %v136_v25, %v96_v29 }
  0xb8   :  { %v101_v32 = vsel %vm100_vm3, %v136_v25, %v97_v31 }
  0xb9   :  { %v102_v33 = vmul.f32 %v101_v32, %v46_v30 }
  0xbb   :  { %v103_v35 = vmul.f32 %v102_v33, %v79_v18  ;;  %v105_v36 = vperm.slane %v102_v33, 0 }
  0xbd   :  { %v104_v37 = vsub.f32 %v47_v34, %v103_v35  ;;  %v106_v38 = vmul.f32 %v105_v36, %v70_v5 }
  0xbf   :  { %v107_v39 = vperm.slane %v104_v37, 0 }
  0xc1   :  { %v108_v40 = vadd.f32 %v107_v39, %v106_v38 }
  0xc3   :  { %137 = vtanh.f32 %v108_v40 }
  0xc9   :  { %v138_v41 = vpop.eup %137 }
  0xca   :  { %110 = vst [vmem:[#allocation7] sm:$0xff] %v138_v41 }
  0xcb   :  { %121 = dma.vmem_to_hbm [thread:$0]  %s117_s1, 128, %s119_s23, [#allocation4]  }
  0xcc   :  { %215 = dma.done.wait [#allocation4], 128  }
  0xcd   :  { %216 = vsyncadd [#allocation4], 4294967168 }
  0xce   :  { %126 = vsyncpa [#allocation3], 1 }
  0xcf   :  { %127 = vsyncpa [#allocation6], 1 }
  0xd0   :  { %128 = vsyncpa [#allocation4], 1 }

</bundles_post_ra>
